<compile_context>
chip_gen: v5e
topology: v5e:2x2
jax: 0.10.0
libtpu: 0.0.40
codegen_flags: <defaults>
</compile_context>

<pallas_src>
import functools

import jax
import jax.numpy as jnp
from jax.experimental import pallas as pl
from jax.experimental.pallas import tpu as pltpu


def _round_up(v, m):
    return (v + m - 1) // m * m


# ----------------------------------------------------------------------------
# Kernel body: whole MLP fused; activation `h` lives in vregs/VMEM throughout.
# ----------------------------------------------------------------------------
def _fused_mlp_kernel(*refs, relu_flags):
    """refs = (x_ref, w0, b0, w1, b1, ..., wL, bL, o_ref)."""
    x_ref = refs[0]
    o_ref = refs[-1]
    wb = refs[1:-1]

    h = x_ref[...].astype(jnp.float32)               # (TILE_B, D0) f32
    for l, relu in enumerate(relu_flags):            # static Python unroll
        w = wb[2 * l][...]                            # (Din_p, Dout_p) bf16
        b = wb[2 * l + 1][...]                        # (1, Dout_p) f32, broadcasts
        # bf16 operands, f32 accumulation on the MXU; bias add stays f32.
        h = jnp.dot(h.astype(w.dtype), w, preferred_element_type=jnp.float32) + b
        if relu:
            h = jnp.maximum(h, 0.0)
    o_ref[...] = h.astype(o_ref.dtype)


# ----------------------------------------------------------------------------
# Parameter construction / one-time padding (hoisted out of the forward path).
# ----------------------------------------------------------------------------
def init_relu_mlp_params(key, n_inputs, n_layers, n_hiddens, dtype=jnp.float32):
    """Deterministic init mimicking nn.Linear's default (uniform +/- 1/sqrt(fan_in))."""
    params = []

    def make_linear(k, fan_in, fan_out):
        kw, kb = jax.random.split(k)
        bound = 1.0 / jnp.sqrt(jnp.asarray(fan_in, dtype=jnp.float32))
        # Stored already transposed: (fan_in, fan_out) == W^T of PyTorch.
        w = jax.random.uniform(kw, (fan_in, fan_out), dtype, -bound, bound)
        b = jax.random.uniform(kb, (fan_out,), dtype, -bound, bound)
        return w, b

    keys = jax.random.split(key, n_layers + 2)
    params.append(make_linear(keys[0], n_inputs, n_hiddens))     # input layer
    for i in range(n_layers):                                    # hidden layers
        params.append(make_linear(keys[1 + i], n_hiddens, n_hiddens))
    params.append(make_linear(keys[-1], n_hiddens, n_inputs))    # output layer
    return params


def pad_relu_mlp_params(params, weight_dtype=jnp.bfloat16):
    """Pad every feature dim up to a multiple of 128 (lane-dense) and cast
    weights to bf16 (MXU-native). Do this ONCE at parameter creation; the
    padded pytree is what relu_mlp_forward consumes (no per-call padding)."""
    padded = []
    for w, b in params:
        din, dout = w.shape
        din_p, dout_p = _round_up(din, 128), _round_up(dout, 128)
        wp = (jnp.zeros((din_p, dout_p), weight_dtype)
              .at[:din, :dout].set(w.astype(weight_dtype)))
        bp = (jnp.zeros((1, dout_p), jnp.float32)
              .at[0, :dout].set(b.astype(jnp.float32)))
        padded.append((wp, bp))
    return padded


# ----------------------------------------------------------------------------
# Forward pass.
# ----------------------------------------------------------------------------
def _pick_tile_b(batch, target_tile):
    """Batch tile: <= target_tile rows, >=2 tiles when B>=16 (feed both v7x
    TensorCores), rounded to 8 (f32 sublane), minimal last-tile padding."""
    n_tiles = pl.cdiv(batch, target_tile)
    if batch >= 16:
        n_tiles = max(n_tiles, 2)
    return _round_up(pl.cdiv(batch, n_tiles), 8)


def _const_block_spec(shape, pipeline_mode):
    index_map = lambda i: (0,) * len(shape)
    if pipeline_mode is None:
        return pl.BlockSpec(shape, index_map)
    return pl.BlockSpec(shape, index_map, pipeline_mode=pipeline_mode)


def relu_mlp_forward(x, padded_params, n_layers, n_outputs):
    """Fused forward pass.

    x:             (B, n_inputs) f32
    padded_params: output of pad_relu_mlp_params (bf16 weights, f32 biases,
                   feature dims padded to multiples of 128)
    n_outputs:     true (unpadded) output width (== n_inputs for this module)
    """
    B, n_in = x.shape
    n_total = n_layers + 2
    assert len(padded_params) == n_total
    relu_flags = tuple([False] + [True] * n_layers + [False])

    in_pad = padded_params[0][0].shape[0]     # padded n_inputs
    out_pad = padded_params[-1][0].shape[1]   # padded n_inputs (output width)
    assert n_in <= in_pad and n_outputs <= out_pad

    # --- Hardware query: VMEM capacity drives tile target + budget cap. ------
    vmem_cap = 64 << 20
    try:
        vmem_cap = int(getattr(pltpu.get_tpu_info(), "vmem_capacity_bytes", vmem_cap))
    except Exception:
        pass
    target_tile = 1024 if vmem_cap >= (96 << 20) else 512   # v5e/v6e vs v7x

    tile_b = _pick_tile_b(B, target_tile)
    b_pad = _round_up(B, tile_b)
    grid = (b_pad // tile_b,)

    xp = x
    if (b_pad, in_pad) != (B, n_in):
        xp = jnp.zeros((b_pad, in_pad), x.dtype).at[:B, :n_in].set(x)

    # --- Cost / VMEM accounting. ---------------------------------------------
    weight_bytes = sum(wp.size * wp.dtype.itemsize + bp.size * bp.dtype.itemsize
                       for wp, bp in padded_params)
    max_width = max(wp.shape[1] for wp, _ in padded_params)
    flops = sum(2 * b_pad * wp.shape[0] * wp.shape[1] for wp, _ in padded_params)
    bytes_accessed = (xp.size * xp.dtype.itemsize + weight_bytes
                      + b_pad * out_pad * x.dtype.itemsize)

    act_bytes = tile_b * max(in_pad, max_width) * (4 + 2)   # live f32 h + bf16 copy
    headroom = 8 << 20                                       # Mosaic internal scratch

    def _vmem_limit(weight_buf_count):
        need = (weight_buf_count * weight_bytes
                + 2 * tile_b * in_pad * 4       # double-buffered x tiles
                + 2 * tile_b * out_pad * 4      # double-buffered y tiles
                + act_bytes)
        if need > vmem_cap - headroom:
            # TODO(synk): add a K/N-tiled weight-streaming fallback (grid axis
            # over hidden dim + f32 accumulator scratch) for MLPs whose resident
            # weights outgrow VMEM (mainly v7x's 64 MiB).
            raise NotImplementedError(
                f"Resident-weight fused MLP needs {need} B VMEM but only "
                f"{vmem_cap - headroom} B available.")
        return int(max(min(need + need // 4, vmem_cap - headroom), 16 << 20))

    kernel = functools.partial(_fused_mlp_kernel, relu_flags=relu_flags)

    def _build_and_run(weight_pipeline_mode, weight_buf_count):
        vmem_limit = _vmem_limit(weight_buf_count)
        in_specs = [pl.BlockSpec((tile_b, in_pad), lambda i: (i, 0))]
        args = [xp]
        for wp, bp in padded_params:
            # Full-block, constant index_map => fetched once, VMEM-resident.
            in_specs.append(_const_block_spec(wp.shape, weight_pipeline_mode))
            in_specs.append(_const_block_spec(bp.shape, weight_pipeline_mode))
            args.extend([wp, bp])
        return pl.pallas_call(
            kernel,
            out_shape=jax.ShapeDtypeStruct((b_pad, out_pad), x.dtype),
            grid_spec=pltpu.PrefetchScalarGridSpec(
                num_scalar_prefetch=0,
                grid=grid,
                in_specs=in_specs,
                out_specs=pl.BlockSpec((tile_b, out_pad), lambda i: (i, 0)),
            ),
            compiler_params=pltpu.CompilerParams(
                dimension_semantics=("parallel",),   # shard batch tiles across TCs
                vmem_limit_bytes=vmem_limit,
            ),
            cost_estimate=pl.CostEstimate(
                flops=flops, transcendentals=0, bytes_accessed=bytes_accessed),
        )(*args)

    try:
        # Weights are read-only with a constant index_map: single buffer is enough.
        yp = _build_and_run(pl.Buffered(1), 1)
    except NotImplementedError:
        raise
    except Exception:
        # Installed Pallas build rejected pipeline_mode=Buffered(1); fall back
        # to default (double-buffered) weight specs.
        yp = _build_and_run(None, 2)

    # Slice off batch / feature padding.
    return yp[:B, :n_outputs]


# ----------------------------------------------------------------------------
# Self-test.
# ----------------------------------------------------------------------------
if __name__ == "__main__":
    n_inputs, n_layers, n_hiddens = 16, 2, 32
    batch = 8

    key = jax.random.PRNGKey(0)
    k_params, k_x = jax.random.split(key)
    params = init_relu_mlp_params(k_params, n_inputs, n_layers, n_hiddens)
    padded_params = pad_relu_mlp_params(params)   # padding/cast done ONCE here
    x = jax.random.normal(k_x, (batch, n_inputs), dtype=jnp.float32)

    y = relu_mlp_forward(x, padded_params, n_layers, n_outputs=n_inputs)
    y = jax.block_until_ready(y)
    assert y.shape == (batch, n_inputs)

    # Reference 1: bf16-operand / f32-accumulate (matches kernel numerics).
    def ref_forward_bf16(x, params, n_layers):
        flags = [False] + [True] * n_layers + [False]
        h = x
        for (w, b), relu in zip(params, flags):
            h = jnp.dot(h.astype(jnp.bfloat16), w.astype(jnp.bfloat16),
                        preferred_element_type=jnp.float32) + b.astype(jnp.float32)
            if relu:
                h = jnp.maximum(h, 0.0)
        return h

    # Reference 2: pure f32 module semantics (loose check on bf16 matmul error).
    def ref_forward_f32(x, params, n_layers):
        w, b = params[0]
        h = x @ w + b
        for i in range(n_layers):
            w, b = params[1 + i]
            h = jnp.maximum(h @ w + b, 0.0)
        w, b = params[-1]
        return h @ w + b

    y_bf16 = ref_forward_bf16(x, params, n_layers)
    y_f32 = ref_forward_f32(x, params, n_layers)
    assert jnp.allclose(y, y_bf16, atol=2e-3, rtol=2e-3), float(jnp.max(jnp.abs(y - y_bf16)))
    assert jnp.allclose(y, y_f32, atol=5e-2, rtol=5e-2), float(jnp.max(jnp.abs(y - y_f32)))
    print("KERNEL_OK")
</pallas_src>

<mosaic_0001>
module attributes {stable_mosaic.version = 11 : i64} {
  func.func @_fused_mlp_kernel(%arg0: i32, %arg1: memref<8x128xf32, #tpu.memory_space<vmem>>, %arg2: memref<128x128xbf16, #tpu.memory_space<vmem>>, %arg3: memref<1x128xf32, #tpu.memory_space<vmem>>, %arg4: memref<128x128xbf16, #tpu.memory_space<vmem>>, %arg5: memref<1x128xf32, #tpu.memory_space<vmem>>, %arg6: memref<128x128xbf16, #tpu.memory_space<vmem>>, %arg7: memref<1x128xf32, #tpu.memory_space<vmem>>, %arg8: memref<128x128xbf16, #tpu.memory_space<vmem>>, %arg9: memref<1x128xf32, #tpu.memory_space<vmem>>, %arg10: memref<8x128xf32, #tpu.memory_space<vmem>>) attributes {dimension_semantics = [#tpu.dimension_semantics<parallel>], iteration_bounds = array<i64: 1>, scalar_prefetch = 0 : i64, scratch_operands = 0 : i64, tpu.core_type = #tpu.core_type<tc>, window_params = [{transform_indices = @transform_0, window_bounds = array<i64: 8, 128>}, {pipeline_mode = #tpu.pipeline_mode<synchronous>, transform_indices = @transform_1, window_bounds = array<i64: 128, 128>}, {pipeline_mode = #tpu.pipeline_mode<synchronous>, transform_indices = @transform_2, window_bounds = array<i64: 1, 128>}, {pipeline_mode = #tpu.pipeline_mode<synchronous>, transform_indices = @transform_3, window_bounds = array<i64: 128, 128>}, {pipeline_mode = #tpu.pipeline_mode<synchronous>, transform_indices = @transform_4, window_bounds = array<i64: 1, 128>}, {pipeline_mode = #tpu.pipeline_mode<synchronous>, transform_indices = @transform_5, window_bounds = array<i64: 128, 128>}, {pipeline_mode = #tpu.pipeline_mode<synchronous>, transform_indices = @transform_6, window_bounds = array<i64: 1, 128>}, {pipeline_mode = #tpu.pipeline_mode<synchronous>, transform_indices = @transform_7, window_bounds = array<i64: 128, 128>}, {pipeline_mode = #tpu.pipeline_mode<synchronous>, transform_indices = @transform_8, window_bounds = array<i64: 1, 128>}, {transform_indices = @transform_9, window_bounds = array<i64: 8, 128>}]} {
    %c0 = arith.constant 0 : index
    %c0_0 = arith.constant 0 : index
    %0 = vector.load %arg1[%c0, %c0_0] : memref<8x128xf32, #tpu.memory_space<vmem>>, vector<8x128xf32>
    %c0_1 = arith.constant 0 : index
    %c0_2 = arith.constant 0 : index
    %1 = vector.load %arg2[%c0_1, %c0_2] : memref<128x128xbf16, #tpu.memory_space<vmem>>, vector<128x128xbf16>
    %c0_3 = arith.constant 0 : index
    %c0_4 = arith.constant 0 : index
    %2 = vector.load %arg3[%c0_3, %c0_4] : memref<1x128xf32, #tpu.memory_space<vmem>>, vector<1x128xf32>
    %3 = arith.truncf %0 : vector<8x128xf32> to vector<8x128xbf16>
    %cst = arith.constant dense<0.000000e+00> : vector<8x128xf32>
    %4 = tpu.matmul %3, %1, %cst {dimension_numbers = #tpu.dot_dimension_numbers<[1], [0], [0], [1], [0, 0, 1, 1], [], []>} : vector<8x128xbf16>, vector<128x128xbf16>, vector<8x128xf32> -> vector<8x128xf32>
    %5 = vector.broadcast %2 : vector<1x128xf32> to vector<8x128xf32>
    %6 = arith.addf %4, %5 : vector<8x128xf32>
    %c0_5 = arith.constant 0 : index
    %c0_6 = arith.constant 0 : index
    %7 = vector.load %arg4[%c0_5, %c0_6] : memref<128x128xbf16, #tpu.memory_space<vmem>>, vector<128x128xbf16>
    %c0_7 = arith.constant 0 : index
    %c0_8 = arith.constant 0 : index
    %8 = vector.load %arg5[%c0_7, %c0_8] : memref<1x128xf32, #tpu.memory_space<vmem>>, vector<1x128xf32>
    %9 = arith.truncf %6 : vector<8x128xf32> to vector<8x128xbf16>
    %cst_9 = arith.constant dense<0.000000e+00> : vector<8x128xf32>
    %10 = tpu.matmul %9, %7, %cst_9 {dimension_numbers = #tpu.dot_dimension_numbers<[1], [0], [0], [1], [0, 0, 1, 1], [], []>} : vector<8x128xbf16>, vector<128x128xbf16>, vector<8x128xf32> -> vector<8x128xf32>
    %11 = vector.broadcast %8 : vector<1x128xf32> to vector<8x128xf32>
    %12 = arith.addf %10, %11 : vector<8x128xf32>
    %cst_10 = arith.constant 0.000000e+00 : f32
    %13 = vector.broadcast %cst_10 : f32 to vector<8x128xf32>
    %14 = arith.maximumf %12, %13 : vector<8x128xf32>
    %c0_11 = arith.constant 0 : index
    %c0_12 = arith.constant 0 : index
    %15 = vector.load %arg6[%c0_11, %c0_12] : memref<128x128xbf16, #tpu.memory_space<vmem>>, vector<128x128xbf16>
    %c0_13 = arith.constant 0 : index
    %c0_14 = arith.constant 0 : index
    %16 = vector.load %arg7[%c0_13, %c0_14] : memref<1x128xf32, #tpu.memory_space<vmem>>, vector<1x128xf32>
    %17 = arith.truncf %14 : vector<8x128xf32> to vector<8x128xbf16>
    %cst_15 = arith.constant dense<0.000000e+00> : vector<8x128xf32>
    %18 = tpu.matmul %17, %15, %cst_15 {dimension_numbers = #tpu.dot_dimension_numbers<[1], [0], [0], [1], [0, 0, 1, 1], [], []>} : vector<8x128xbf16>, vector<128x128xbf16>, vector<8x128xf32> -> vector<8x128xf32>
    %19 = vector.broadcast %16 : vector<1x128xf32> to vector<8x128xf32>
    %20 = arith.addf %18, %19 : vector<8x128xf32>
    %cst_16 = arith.constant 0.000000e+00 : f32
    %21 = vector.broadcast %cst_16 : f32 to vector<8x128xf32>
    %22 = arith.maximumf %20, %21 : vector<8x128xf32>
    %c0_17 = arith.constant 0 : index
    %c0_18 = arith.constant 0 : index
    %23 = vector.load %arg8[%c0_17, %c0_18] : memref<128x128xbf16, #tpu.memory_space<vmem>>, vector<128x128xbf16>
    %c0_19 = arith.constant 0 : index
    %c0_20 = arith.constant 0 : index
    %24 = vector.load %arg9[%c0_19, %c0_20] : memref<1x128xf32, #tpu.memory_space<vmem>>, vector<1x128xf32>
    %25 = arith.truncf %22 : vector<8x128xf32> to vector<8x128xbf16>
    %cst_21 = arith.constant dense<0.000000e+00> : vector<8x128xf32>
    %26 = tpu.matmul %25, %23, %cst_21 {dimension_numbers = #tpu.dot_dimension_numbers<[1], [0], [0], [1], [0, 0, 1, 1], [], []>} : vector<8x128xbf16>, vector<128x128xbf16>, vector<8x128xf32> -> vector<8x128xf32>
    %27 = vector.broadcast %24 : vector<1x128xf32> to vector<8x128xf32>
    %28 = arith.addf %26, %27 : vector<8x128xf32>
    %c0_22 = arith.constant 0 : index
    %c0_23 = arith.constant 0 : index
    %29 = vector.load %arg10[%c0_22, %c0_23] : memref<8x128xf32, #tpu.memory_space<vmem>>, vector<8x128xf32>
    tpu.vector_store %arg10[%c0_22, %c0_23], %28 {strides = array<i32>} : memref<8x128xf32, #tpu.memory_space<vmem>>, vector<8x128xf32>,
    return
  }
  func.func @transform_0(%arg0: i32) -> (i32, i32) {
    %c0_i32 = arith.constant 0 : i32
    %c0_i32_0 = arith.constant 0 : i32
    return %arg0, %c0_i32 : i32, i32
  }
  func.func @transform_1(%arg0: i32) -> (i32, i32) {
    %c0_i32 = arith.constant 0 : i32
    %c0_i32_0 = arith.constant 0 : i32
    %c0_i32_1 = arith.constant 0 : i32
    return %c0_i32, %c0_i32_0 : i32, i32
  }
  func.func @transform_2(%arg0: i32) -> (i32, i32) {
    %c0_i32 = arith.constant 0 : i32
    %c0_i32_0 = arith.constant 0 : i32
    %c0_i32_1 = arith.constant 0 : i32
    return %c0_i32, %c0_i32_0 : i32, i32
  }
  func.func @transform_3(%arg0: i32) -> (i32, i32) {
    %c0_i32 = arith.constant 0 : i32
    %c0_i32_0 = arith.constant 0 : i32
    %c0_i32_1 = arith.constant 0 : i32
    return %c0_i32, %c0_i32_0 : i32, i32
  }
  func.func @transform_4(%arg0: i32) -> (i32, i32) {
    %c0_i32 = arith.constant 0 : i32
    %c0_i32_0 = arith.constant 0 : i32
    %c0_i32_1 = arith.constant 0 : i32
    return %c0_i32, %c0_i32_0 : i32, i32
  }
  func.func @transform_5(%arg0: i32) -> (i32, i32) {
    %c0_i32 = arith.constant 0 : i32
    %c0_i32_0 = arith.constant 0 : i32
    %c0_i32_1 = arith.constant 0 : i32
    return %c0_i32, %c0_i32_0 : i32, i32
  }
  func.func @transform_6(%arg0: i32) -> (i32, i32) {
    %c0_i32 = arith.constant 0 : i32
    %c0_i32_0 = arith.constant 0 : i32
    %c0_i32_1 = arith.constant 0 : i32
    return %c0_i32, %c0_i32_0 : i32, i32
  }
  func.func @transform_7(%arg0: i32) -> (i32, i32) {
    %c0_i32 = arith.constant 0 : i32
    %c0_i32_0 = arith.constant 0 : i32
    %c0_i32_1 = arith.constant 0 : i32
    return %c0_i32, %c0_i32_0 : i32, i32
  }
  func.func @transform_8(%arg0: i32) -> (i32, i32) {
    %c0_i32 = arith.constant 0 : i32
    %c0_i32_0 = arith.constant 0 : i32
    %c0_i32_1 = arith.constant 0 : i32
    return %c0_i32, %c0_i32_0 : i32, i32
  }
  func.func @transform_9(%arg0: i32) -> (i32, i32) {
    %c0_i32 = arith.constant 0 : i32
    %c0_i32_0 = arith.constant 0 : i32
    return %arg0, %c0_i32 : i32, i32
  }
}

module attributes {stable_mosaic.version = 11 : i64} {
  func.func @_fused_mlp_kernel(%arg0: i32, %arg1: memref<8x128xf32, #tpu.memory_space<vmem>>, %arg2: memref<128x128xbf16, #tpu.memory_space<vmem>>, %arg3: memref<1x128xf32, #tpu.memory_space<vmem>>, %arg4: memref<128x128xbf16, #tpu.memory_space<vmem>>, %arg5: memref<1x128xf32, #tpu.memory_space<vmem>>, %arg6: memref<128x128xbf16, #tpu.memory_space<vmem>>, %arg7: memref<1x128xf32, #tpu.memory_space<vmem>>, %arg8: memref<128x128xbf16, #tpu.memory_space<vmem>>, %arg9: memref<1x128xf32, #tpu.memory_space<vmem>>, %arg10: memref<8x128xf32, #tpu.memory_space<vmem>>) attributes {dimension_semantics = [#tpu.dimension_semantics<parallel>], iteration_bounds = array<i64: 1>, scalar_prefetch = 0 : i64, scratch_operands = 0 : i64, tpu.core_type = #tpu.core_type<tc>, window_params = [{transform_indices = @transform_0, window_bounds = array<i64: 8, 128>}, {pipeline_mode = #tpu.pipeline_mode<synchronous>, transform_indices = @transform_1, window_bounds = array<i64: 128, 128>}, {pipeline_mode = #tpu.pipeline_mode<synchronous>, transform_indices = @transform_2, window_bounds = array<i64: 1, 128>}, {pipeline_mode = #tpu.pipeline_mode<synchronous>, transform_indices = @transform_3, window_bounds = array<i64: 128, 128>}, {pipeline_mode = #tpu.pipeline_mode<synchronous>, transform_indices = @transform_4, window_bounds = array<i64: 1, 128>}, {pipeline_mode = #tpu.pipeline_mode<synchronous>, transform_indices = @transform_5, window_bounds = array<i64: 128, 128>}, {pipeline_mode = #tpu.pipeline_mode<synchronous>, transform_indices = @transform_6, window_bounds = array<i64: 1, 128>}, {pipeline_mode = #tpu.pipeline_mode<synchronous>, transform_indices = @transform_7, window_bounds = array<i64: 128, 128>}, {pipeline_mode = #tpu.pipeline_mode<synchronous>, transform_indices = @transform_8, window_bounds = array<i64: 1, 128>}, {transform_indices = @transform_9, window_bounds = array<i64: 8, 128>}]} {
    %c0 = arith.constant 0 : index
    %c0_0 = arith.constant 0 : index
    %0 = vector.load %arg1[%c0, %c0_0] : memref<8x128xf32, #tpu.memory_space<vmem>>, vector<8x128xf32>
    %c0_1 = arith.constant 0 : index
    %c0_2 = arith.constant 0 : index
    %1 = vector.load %arg2[%c0_1, %c0_2] : memref<128x128xbf16, #tpu.memory_space<vmem>>, vector<128x128xbf16>
    %c0_3 = arith.constant 0 : index
    %c0_4 = arith.constant 0 : index
    %2 = vector.load %arg3[%c0_3, %c0_4] : memref<1x128xf32, #tpu.memory_space<vmem>>, vector<1x128xf32>
    %3 = arith.truncf %0 : vector<8x128xf32> to vector<8x128xbf16>
    %cst = arith.constant dense<0.000000e+00> : vector<8x128xf32>
    %4 = tpu.matmul %3, %1, %cst {dimension_numbers = #tpu.dot_dimension_numbers<[1], [0], [0], [1], [0, 0, 1, 1], [], []>} : vector<8x128xbf16>, vector<128x128xbf16>, vector<8x128xf32> -> vector<8x128xf32>
    %5 = vector.broadcast %2 : vector<1x128xf32> to vector<8x128xf32>
    %6 = arith.addf %4, %5 : vector<8x128xf32>
    %c0_5 = arith.constant 0 : index
    %c0_6 = arith.constant 0 : index
    %7 = vector.load %arg4[%c0_5, %c0_6] : memref<128x128xbf16, #tpu.memory_space<vmem>>, vector<128x128xbf16>
    %c0_7 = arith.constant 0 : index
    %c0_8 = arith.constant 0 : index
    %8 = vector.load %arg5[%c0_7, %c0_8] : memref<1x128xf32, #tpu.memory_space<vmem>>, vector<1x128xf32>
    %9 = arith.truncf %6 : vector<8x128xf32> to vector<8x128xbf16>
    %cst_9 = arith.constant dense<0.000000e+00> : vector<8x128xf32>
    %10 = tpu.matmul %9, %7, %cst_9 {dimension_numbers = #tpu.dot_dimension_numbers<[1], [0], [0], [1], [0, 0, 1, 1], [], []>} : vector<8x128xbf16>, vector<128x128xbf16>, vector<8x128xf32> -> vector<8x128xf32>
    %11 = vector.broadcast %8 : vector<1x128xf32> to vector<8x128xf32>
    %12 = arith.addf %10, %11 : vector<8x128xf32>
    %cst_10 = arith.constant 0.000000e+00 : f32
    %13 = vector.broadcast %cst_10 : f32 to vector<8x128xf32>
    %14 = arith.maximumf %12, %13 : vector<8x128xf32>
    %c0_11 = arith.constant 0 : index
    %c0_12 = arith.constant 0 : index
    %15 = vector.load %arg6[%c0_11, %c0_12] : memref<128x128xbf16, #tpu.memory_space<vmem>>, vector<128x128xbf16>
    %c0_13 = arith.constant 0 : index
    %c0_14 = arith.constant 0 : index
    %16 = vector.load %arg7[%c0_13, %c0_14] : memref<1x128xf32, #tpu.memory_space<vmem>>, vector<1x128xf32>
    %17 = arith.truncf %14 : vector<8x128xf32> to vector<8x128xbf16>
    %cst_15 = arith.constant dense<0.000000e+00> : vector<8x128xf32>
    %18 = tpu.matmul %17, %15, %cst_15 {dimension_numbers = #tpu.dot_dimension_numbers<[1], [0], [0], [1], [0, 0, 1, 1], [], []>} : vector<8x128xbf16>, vector<128x128xbf16>, vector<8x128xf32> -> vector<8x128xf32>
    %19 = vector.broadcast %16 : vector<1x128xf32> to vector<8x128xf32>
    %20 = arith.addf %18, %19 : vector<8x128xf32>
    %cst_16 = arith.constant 0.000000e+00 : f32
    %21 = vector.broadcast %cst_16 : f32 to vector<8x128xf32>
    %22 = arith.maximumf %20, %21 : vector<8x128xf32>
    %c0_17 = arith.constant 0 : index
    %c0_18 = arith.constant 0 : index
    %23 = vector.load %arg8[%c0_17, %c0_18] : memref<128x128xbf16, #tpu.memory_space<vmem>>, vector<128x128xbf16>
    %c0_19 = arith.constant 0 : index
    %c0_20 = arith.constant 0 : index
    %24 = vector.load %arg9[%c0_19, %c0_20] : memref<1x128xf32, #tpu.memory_space<vmem>>, vector<1x128xf32>
    %25 = arith.truncf %22 : vector<8x128xf32> to vector<8x128xbf16>
    %cst_21 = arith.constant dense<0.000000e+00> : vector<8x128xf32>
    %26 = tpu.matmul %25, %23, %cst_21 {dimension_numbers = #tpu.dot_dimension_numbers<[1], [0], [0], [1], [0, 0, 1, 1], [], []>} : vector<8x128xbf16>, vector<128x128xbf16>, vector<8x128xf32> -> vector<8x128xf32>
    %27 = vector.broadcast %24 : vector<1x128xf32> to vector<8x128xf32>
    %28 = arith.addf %26, %27 : vector<8x128xf32>
    %c0_22 = arith.constant 0 : index
    %c0_23 = arith.constant 0 : index
    %29 = vector.load %arg10[%c0_22, %c0_23] : memref<8x128xf32, #tpu.memory_space<vmem>>, vector<8x128xf32>
    tpu.vector_store %arg10[%c0_22, %c0_23], %28 {strides = array<i32>} : memref<8x128xf32, #tpu.memory_space<vmem>>, vector<8x128xf32>,
    return
  }
  func.func @transform_0(%arg0: i32) -> (i32, i32) {
    %c0_i32 = arith.constant 0 : i32
    %c0_i32_0 = arith.constant 0 : i32
    return %arg0, %c0_i32 : i32, i32
  }
  func.func @transform_1(%arg0: i32) -> (i32, i32) {
    %c0_i32 = arith.constant 0 : i32
    %c0_i32_0 = arith.constant 0 : i32
    %c0_i32_1 = arith.constant 0 : i32
    return %c0_i32, %c0_i32_0 : i32, i32
  }
  func.func @transform_2(%arg0: i32) -> (i32, i32) {
    %c0_i32 = arith.constant 0 : i32
    %c0_i32_0 = arith.constant 0 : i32
    %c0_i32_1 = arith.constant 0 : i32
    return %c0_i32, %c0_i32_0 : i32, i32
  }
  func.func @transform_3(%arg0: i32) -> (i32, i32) {
    %c0_i32 = arith.constant 0 : i32
    %c0_i32_0 = arith.constant 0 : i32
    %c0_i32_1 = arith.constant 0 : i32
    return %c0_i32, %c0_i32_0 : i32, i32
  }
  func.func @transform_4(%arg0: i32) -> (i32, i32) {
    %c0_i32 = arith.constant 0 : i32
    %c0_i32_0 = arith.constant 0 : i32
    %c0_i32_1 = arith.constant 0 : i32
    return %c0_i32, %c0_i32_0 : i32, i32
  }
  func.func @transform_5(%arg0: i32) -> (i32, i32) {
    %c0_i32 = arith.constant 0 : i32
    %c0_i32_0 = arith.constant 0 : i32
    %c0_i32_1 = arith.constant 0 : i32
    return %c0_i32, %c0_i32_0 : i32, i32
  }
  func.func @transform_6(%arg0: i32) -> (i32, i32) {
    %c0_i32 = arith.constant 0 : i32
    %c0_i32_0 = arith.constant 0 : i32
    %c0_i32_1 = arith.constant 0 : i32
    return %c0_i32, %c0_i32_0 : i32, i32
  }
  func.func @transform_7(%arg0: i32) -> (i32, i32) {
    %c0_i32 = arith.constant 0 : i32
    %c0_i32_0 = arith.constant 0 : i32
    %c0_i32_1 = arith.constant 0 : i32
    return %c0_i32, %c0_i32_0 : i32, i32
  }
  func.func @transform_8(%arg0: i32) -> (i32, i32) {
    %c0_i32 = arith.constant 0 : i32
    %c0_i32_0 = arith.constant 0 : i32
    %c0_i32_1 = arith.constant 0 : i32
    return %c0_i32, %c0_i32_0 : i32, i32
  }
  func.func @transform_9(%arg0: i32) -> (i32, i32) {
    %c0_i32 = arith.constant 0 : i32
    %c0_i32_0 = arith.constant 0 : i32
    return %arg0, %c0_i32 : i32, i32
  }
}

</mosaic_0001>

<bundles_post_ra>
// kernel: tpu_custom_call.1
= control target key start
LH: loop header
LB: loop body
LE: loop exit
PB: predicated region body
PF: predicated region fallthrough
CT: control target
= control target key end

     0   :  { %14 = vsyncpa [#allocation3], 0  ;;  %s872_s0 = inlined_call_operand.hbm [shape: f32[8,128], index: 0, kind: input, shape index: {}]   ;;  %s873_s1 = inlined_call_operand.hbm [shape: bf16[128,128], index: 1, kind: input, shape index: {}]   ;;  %s874_s2 = inlined_call_operand.vmem [shape: f32[1,128], index: 2, kind: input, shape index: {}]   ;;  %s875_s3 = inlined_call_operand.hbm [shape: bf16[128,128], index: 3, kind: input, shape index: {}]   ;;  %s876_s4 = inlined_call_operand.vmem [shape: f32[1,128], index: 4, kind: input, shape index: {}]   ;;  %s877_s5 = inlined_call_operand.hbm [shape: bf16[128,128], index: 5, kind: input, shape index: {}]   ;;  %s878_s6 = inlined_call_operand.vmem [shape: f32[1,128], index: 6, kind: input, shape index: {}]   ;;  %s879_s7 = inlined_call_operand.hbm [shape: bf16[128,128], index: 7, kind: input, shape index: {}]   ;;  %s880_s8 = inlined_call_operand.vmem [shape: f32[1,128], index: 8, kind: input, shape index: {}]   ;;  %s881_s9 = inlined_call_operand.hbm [shape: f32[8,128], index: 9, kind: output, shape index: {}]  }
   0x1   :  { %15 = vsyncpa [#allocation6], 0 }
   0x2   :  { %16 = vsyncpa [#allocation9], 0  ;;  %s33_s11 = sshll.u32 %s873_s1, 4  ;;  %s34_s11 = int_to_ptr.hbm [resolvable:$true] %s33_s11 }
   0x3   :  { %17 = vsyncpa [#allocation4], 0  ;;  %s784_s12 = smov [#allocation5]   ;;  %s63_s16 = sshll.u32 %s877_s5, 4  ;;  %s64_s16 = int_to_ptr.hbm [resolvable:$true] %s63_s16 }
   0x4   :  { %s35_s13 = sshll.u32 %s784_s12, 4  ;;  %s785_s17 = smov 64   ;;  %s36_s13 = int_to_ptr.vmem [resolvable:$true] %s35_s13 }
   0x5   :  { %s786_s18 = smov 4   ;;  %s787_s19 = smov [#allocation8]  }
   0x6   :  { %41 = dma.hbm_to_vmem [thread:$0]  %s34_s11, 1024, %s36_s13, [#allocation6], %s785_s17, %s785_s17, %s786_s18  }
   0x7   :  { %s65_s20 = sshll.u32 %s787_s19, 4  ;;  %s23_s23 = sshll.u32 %s872_s0, 4  ;;  %s66_s20 = int_to_ptr.vmem [resolvable:$true] %s65_s20  ;;  %s24_s23 = int_to_ptr.hbm [resolvable:$true] %s23_s23 }
   0x8   :  { %71 = dma.hbm_to_vmem [thread:$0]  %s64_s16, 1024, %s66_s20, [#allocation9], %s785_s17, %s785_s17, %s786_s18  }
   0x9   :  { %s48_s25 = sshll.u32 %s875_s3, 4  ;;  %s788_s26 = smov [#allocation2]   ;;  %s49_s25 = int_to_ptr.hbm [resolvable:$true] %s48_s25 }
   0xa   :  { %s25_s27 = sshll.u32 %s788_s26, 4  ;;  %s789_s5 = smov [#allocation7]   ;;  %s26_s27 = int_to_ptr.vmem [resolvable:$true] %s25_s27 }
   0xb   :  { %28 = dma.hbm_to_vmem [thread:$0]  %s24_s23, 128, %s26_s27, [#allocation3]  }
   0xc   :  { %s50_s28 = sshll.u32 %s789_s5, 4  ;;  %s78_s10 = sshll.u32 %s879_s7, 4  ;;  %s51_s28 = int_to_ptr.vmem [resolvable:$true] %s50_s28  ;;  %s79_s10 = int_to_ptr.hbm [resolvable:$true] %s78_s10 }
   0xd   :  { %56 = dma.hbm_to_vmem [thread:$0]  %s49_s25, 1024, %s51_s28, [#allocation6], %s785_s17, %s785_s17, %s786_s18  }
   0xe   :  { %s790_s0 = smov [#allocation10]  }
   0xf   :  { %s80_s11 = sshll.u32 %s790_s0, 4  ;;  %s81_s11 = int_to_ptr.vmem [resolvable:$true] %s80_s11 }
  0x10   :  { %86 = dma.hbm_to_vmem [thread:$0]  %s79_s10, 1024, %s81_s11, [#allocation9], %s785_s17, %s785_s17, %s786_s18  }
  0x11   :  { %776 = dma.done.wait [#allocation3], 128  }
  0x12   :  { %777 = vsyncadd [#allocation3], 4294967168 }
  0x13   :  { %778 = dma.done.wait [#allocation6], 2048  }
  0x14   :  { %779 = vsyncadd [#allocation6], 4294965248 }
  0x15   :  { %780 = dma.done.wait [#allocation9], 2048  }
  0x16   :  { %781 = vsyncadd [#allocation9], 4294965248  ;;  %v595_v0 = vld [vmem:[#allocation5 + $0x38] sm:$0xff]  ;;  %v594_v1 = vld [vmem:[#allocation5 + $0x30] sm:$0xff]  ;;  %s791_s16 = smov [#allocation11]   ;;  %s448_s20 = sshll.u32 %s881_s9, 4  ;;  %s449_s20 = int_to_ptr.hbm [resolvable:$true] %s448_s20 }
  0x17   :  { %179 = vmatpush.bf16.msra.mxu0 %v595_v0  ;;  %v603_v2 = vld [vmem:[#allocation7 + $0x38] sm:$0xff]  ;;  %v593_v3 = vld [vmem:[#allocation5 + $0x28] sm:$0xff]  ;;  %v602_v4 = vld [vmem:[#allocation7 + $0x30] sm:$0xff]  ;;  %s446_s17 = sshll.u32 %s791_s16, 4  ;;  %s447_s17 = int_to_ptr.vmem [resolvable:$true] %s446_s17 }
  0x18   :  { %261 = vmatpush.bf16.msra.mxu1 %v603_v2  ;;  %v601_v5 = vld [vmem:[#allocation7 + $0x28] sm:$0xff]  ;;  %v592_v6 = vld [vmem:[#allocation5 + $0x20] sm:$0xff]  ;;  %v591_v8 = vld [vmem:[#allocation5 + $0x18] sm:$0xff] }
  0x19   :  { %v600_v7 = vld [vmem:[#allocation7 + $0x20] sm:$0xff]  ;;  %v599_v9 = vld [vmem:[#allocation7 + $0x18] sm:$0xff]  ;;  %v590_v10 = vld [vmem:[#allocation5 + $0x10] sm:$0xff] }
  0x1a   :  { %v598_v11 = vld [vmem:[#allocation7 + $0x10] sm:$0xff]  ;;  %v589_v12 = vld [vmem:[#allocation5 + $0x8] sm:$0xff]  ;;  %v588_v14 = vld [vmem:[#allocation5] sm:$0xff] }
  0x1b   :  { %180 = vmatpush.bf16.msra.mxu0 %v594_v1  ;;  %v597_v13 = vld [vmem:[#allocation7 + $0x8] sm:$0xff]  ;;  %v109_v15 = vld [vmem:[#allocation2] sm:$0xff]  ;;  %v596_v17 = vld [vmem:[#allocation7] sm:$0xff] }
  0x1c   :  { %262 = vmatpush.bf16.msra.mxu1 %v602_v4  ;;  %v127_v16 = vpack.c.bf16 %v109_v15, %v109_v15  ;;  %v611_v18 = vld [vmem:[#allocation8 + $0x38] sm:$0xff]  ;;  %v610_v19 = vld [vmem:[#allocation8 + $0x30] sm:$0xff]  ;;  %v609_v20 = vld [vmem:[#allocation8 + $0x28] sm:$0xff] }
  0x1d   :  { %344 = vmatpush.bf16.msra.mxu2 %v611_v18  ;;  %v608_v21 = vld [vmem:[#allocation8 + $0x20] sm:$0xff]  ;;  %v607_v22 = vld [vmem:[#allocation8 + $0x18] sm:$0xff]  ;;  %v606_v23 = vld [vmem:[#allocation8 + $0x10] sm:$0xff] }
  0x1e   :  { %v628_v24 = vld [vmem:[%s874_s2] ss:$0 sm:$0xff]  ;;  %v605_v29 = vld [vmem:[#allocation8 + $0x8] sm:$0xff]  ;;  %v604_v30 = vld [vmem:[#allocation8] sm:$0xff] }
  0x1f   :  { %181 = vmatpush.bf16.msra.mxu0 %v593_v3  ;;  %v619_v31 = vld [vmem:[#allocation10 + $0x38] sm:$0xff]  ;;  %v618_v32 = vld [vmem:[#allocation10 + $0x30] sm:$0xff]  ;;  %v617_v33 = vld [vmem:[#allocation10 + $0x28] sm:$0xff] }
  0x20   :  { %263 = vmatpush.bf16.msra.mxu1 %v601_v5  ;;  %427 = vmatpush.bf16.msra.mxu3 %v619_v31  ;;  %v616_v34 = vld [vmem:[#allocation10 + $0x20] sm:$0xff]  ;;  %v615_v35 = vld [vmem:[#allocation10 + $0x18] sm:$0xff]  ;;  %v614_v36 = vld [vmem:[#allocation10 + $0x10] sm:$0xff] }
  0x21   :  { %345 = vmatpush.bf16.msra.mxu2 %v610_v19  ;;  %v629_v37 = vld [vmem:[%s876_s4] ss:$0 sm:$0xff]  ;;  %v613_v43 = vld [vmem:[#allocation10 + $0x8] sm:$0xff]  ;;  %v612_v44 = vld [vmem:[#allocation10] sm:$0xff] }
  0x22   :  { %v630_v45 = vld [vmem:[%s878_s6] ss:$0 sm:$0xff] }
  0x23   :  { %182 = vmatpush.bf16.msra.mxu0 %v592_v6  ;;  %v631_v51 = vld [vmem:[%s880_s8] ss:$0 sm:$0xff] }
  0x24   :  { %264 = vmatpush.bf16.msra.mxu1 %v600_v7  ;;  %428 = vmatpush.bf16.msra.mxu3 %v618_v32 }
  0x25   :  { %346 = vmatpush.bf16.msra.mxu2 %v609_v20 }
  0x27   :  { %183 = vmatpush.bf16.msra.mxu0 %v591_v8 }
  0x28   :  { %265 = vmatpush.bf16.msra.mxu1 %v599_v9  ;;  %429 = vmatpush.bf16.msra.mxu3 %v617_v33 }
  0x29   :  { %347 = vmatpush.bf16.msra.mxu2 %v608_v21 }
  0x2b   :  { %184 = vmatpush.bf16.msra.mxu0 %v590_v10 }
  0x2c   :  { %266 = vmatpush.bf16.msra.mxu1 %v598_v11  ;;  %430 = vmatpush.bf16.msra.mxu3 %v616_v34 }
  0x2d   :  { %348 = vmatpush.bf16.msra.mxu2 %v607_v22 }
  0x2f   :  { %185 = vmatpush.bf16.msra.mxu0 %v589_v12 }
  0x30   :  { %267 = vmatpush.bf16.msra.mxu1 %v597_v13  ;;  %431 = vmatpush.bf16.msra.mxu3 %v615_v35 }
  0x31   :  { %349 = vmatpush.bf16.msra.mxu2 %v606_v23 }
  0x33   :  { %186 = vmatpush.bf16.msra.mxu0 %v588_v14 }
  0x34   :  { %268 = vmatpush.bf16.msra.mxu1 %v596_v17  ;;  %432 = vmatpush.bf16.msra.mxu3 %v614_v36 }
  0x35   :  { %350 = vmatpush.bf16.msra.mxu2 %v605_v29 }
  0x36   :  { %187 = vmatmul.bf16.vlgmr.msra.gmra.mxu0 %v127_v16 }
  0x38   :  { %433 = vmatpush.bf16.msra.mxu3 %v613_v43 }
  0x39   :  { %351 = vmatpush.bf16.msra.mxu2 %v604_v30 }
  0x3c   :  { %434 = vmatpush.bf16.msra.mxu3 %v612_v44 }
  0xb3   :  { %v188_v25 = vpop.f32.mrf.mxu0 }
  0xb4   :  { %v189_v26 = vadd.f32 %v628_v24, %v188_v25 }
  0xb6   :  { %v209_v27 = vpack.c.bf16 %v189_v26, %v189_v26 }
  0xb8   :  { %269 = vmatmul.bf16.vlgmr.msra.gmra.mxu1 %v209_v27 }
  0xbb   :  { %v190_v28 = vpop.f32.mrf.mxu0 }
 0x135   :  { %v270_v38 = vpop.f32.mrf.mxu1 }
 0x136   :  { %v271_v39 = vadd.f32 %v629_v37, %v270_v38 }
 0x138   :  { %v274_v40 = vmax.f32 %v271_v39, 0.0 }
 0x13a   :  { %v292_v41 = vpack.c.bf16 %v274_v40, %v274_v40 }
 0x13c   :  { %352 = vmatmul.bf16.vlgmr.msra.gmra.mxu2 %v292_v41 }
 0x13d   :  { %v272_v42 = vpop.f32.mrf.mxu1 }
 0x1bf   :  { %v353_v46 = vpop.f32.mrf.mxu2 }
 0x1c0   :  { %v354_v47 = vadd.f32 %v630_v45, %v353_v46 }
 0x1c2   :  { %v357_v48 = vmax.f32 %v354_v47, 0.0 }
 0x1c4   :  { %v375_v49 = vpack.c.bf16 %v357_v48, %v357_v48 }
 0x1c6   :  { %435 = vmatmul.bf16.vlgmr.msra.gmra.mxu3 %v375_v49 }
 0x1c7   :  { %v355_v50 = vpop.f32.mrf.mxu2 }
 0x249   :  { %v436_v52 = vpop.f32.mrf.mxu3 }
 0x24a   :  { %v437_v53 = vadd.f32 %v631_v51, %v436_v52 }
 0x24c   :  { %440 = vst [vmem:[#allocation11] sm:$0xff] %v437_v53 }
 0x24d   :  { %451 = dma.vmem_to_hbm [thread:$0]  %s447_s17, 128, %s449_s20, [#allocation4]  }
 0x251   :  { %v438_v54 = vpop.f32.mrf.mxu3 }
 0x252   :  { %782 = dma.done.wait [#allocation4], 128  }
 0x253   :  { %783 = vsyncadd [#allocation4], 4294967168 }
 0x254   :  { %456 = vsyncpa [#allocation3], 1 }
 0x255   :  { %457 = vsyncpa [#allocation6], 1 }
 0x256   :  { %458 = vsyncpa [#allocation9], 1 }
 0x257   :  { %459 = vsyncpa [#allocation4], 1 }

// kernel: tpu_custom_call.1
= control target key start
LH: loop header
LB: loop body
LE: loop exit
PB: predicated region body
PF: predicated region fallthrough
CT: control target
= control target key end

     0   :  { %14 = vsyncpa [#allocation3], 0  ;;  %s872_s0 = inlined_call_operand.hbm [shape: f32[8,128], index: 0, kind: input, shape index: {}]   ;;  %s873_s1 = inlined_call_operand.hbm [shape: bf16[128,128], index: 1, kind: input, shape index: {}]   ;;  %s874_s2 = inlined_call_operand.vmem [shape: f32[1,128], index: 2, kind: input, shape index: {}]   ;;  %s875_s3 = inlined_call_operand.hbm [shape: bf16[128,128], index: 3, kind: input, shape index: {}]   ;;  %s876_s4 = inlined_call_operand.vmem [shape: f32[1,128], index: 4, kind: input, shape index: {}]   ;;  %s877_s5 = inlined_call_operand.hbm [shape: bf16[128,128], index: 5, kind: input, shape index: {}]   ;;  %s878_s6 = inlined_call_operand.vmem [shape: f32[1,128], index: 6, kind: input, shape index: {}]   ;;  %s879_s7 = inlined_call_operand.hbm [shape: bf16[128,128], index: 7, kind: input, shape index: {}]   ;;  %s880_s8 = inlined_call_operand.vmem [shape: f32[1,128], index: 8, kind: input, shape index: {}]   ;;  %s881_s9 = inlined_call_operand.hbm [shape: f32[8,128], index: 9, kind: output, shape index: {}]  }
   0x1   :  { %15 = vsyncpa [#allocation6], 0 }
   0x2   :  { %16 = vsyncpa [#allocation9], 0  ;;  %s33_s11 = sshll.u32 %s873_s1, 4  ;;  %s34_s11 = int_to_ptr.hbm [resolvable:$true] %s33_s11 }
   0x3   :  { %17 = vsyncpa [#allocation4], 0  ;;  %s784_s12 = smov [#allocation5]   ;;  %s63_s16 = sshll.u32 %s877_s5, 4  ;;  %s64_s16 = int_to_ptr.hbm [resolvable:$true] %s63_s16 }
   0x4   :  { %s35_s13 = sshll.u32 %s784_s12, 4  ;;  %s785_s17 = smov 64   ;;  %s36_s13 = int_to_ptr.vmem [resolvable:$true] %s35_s13 }
   0x5   :  { %s786_s18 = smov 4   ;;  %s787_s19 = smov [#allocation8]  }
   0x6   :  { %41 = dma.hbm_to_vmem [thread:$0]  %s34_s11, 1024, %s36_s13, [#allocation6], %s785_s17, %s785_s17, %s786_s18  }
   0x7   :  { %s65_s20 = sshll.u32 %s787_s19, 4  ;;  %s23_s23 = sshll.u32 %s872_s0, 4  ;;  %s66_s20 = int_to_ptr.vmem [resolvable:$true] %s65_s20  ;;  %s24_s23 = int_to_ptr.hbm [resolvable:$true] %s23_s23 }
   0x8   :  { %71 = dma.hbm_to_vmem [thread:$0]  %s64_s16, 1024, %s66_s20, [#allocation9], %s785_s17, %s785_s17, %s786_s18  }
   0x9   :  { %s48_s25 = sshll.u32 %s875_s3, 4  ;;  %s788_s26 = smov [#allocation2]   ;;  %s49_s25 = int_to_ptr.hbm [resolvable:$true] %s48_s25 }
   0xa   :  { %s25_s27 = sshll.u32 %s788_s26, 4  ;;  %s789_s5 = smov [#allocation7]   ;;  %s26_s27 = int_to_ptr.vmem [resolvable:$true] %s25_s27 }
   0xb   :  { %28 = dma.hbm_to_vmem [thread:$0]  %s24_s23, 128, %s26_s27, [#allocation3]  }
   0xc   :  { %s50_s28 = sshll.u32 %s789_s5, 4  ;;  %s78_s10 = sshll.u32 %s879_s7, 4  ;;  %s51_s28 = int_to_ptr.vmem [resolvable:$true] %s50_s28  ;;  %s79_s10 = int_to_ptr.hbm [resolvable:$true] %s78_s10 }
   0xd   :  { %56 = dma.hbm_to_vmem [thread:$0]  %s49_s25, 1024, %s51_s28, [#allocation6], %s785_s17, %s785_s17, %s786_s18  }
   0xe   :  { %s790_s0 = smov [#allocation10]  }
   0xf   :  { %s80_s11 = sshll.u32 %s790_s0, 4  ;;  %s81_s11 = int_to_ptr.vmem [resolvable:$true] %s80_s11 }
  0x10   :  { %86 = dma.hbm_to_vmem [thread:$0]  %s79_s10, 1024, %s81_s11, [#allocation9], %s785_s17, %s785_s17, %s786_s18  }
  0x11   :  { %776 = dma.done.wait [#allocation3], 128  }
  0x12   :  { %777 = vsyncadd [#allocation3], 4294967168 }
  0x13   :  { %778 = dma.done.wait [#allocation6], 2048  }
  0x14   :  { %779 = vsyncadd [#allocation6], 4294965248 }
  0x15   :  { %780 = dma.done.wait [#allocation9], 2048  }
  0x16   :  { %781 = vsyncadd [#allocation9], 4294965248  ;;  %v595_v0 = vld [vmem:[#allocation5 + $0x38] sm:$0xff]  ;;  %v594_v1 = vld [vmem:[#allocation5 + $0x30] sm:$0xff]  ;;  %s791_s16 = smov [#allocation11]   ;;  %s448_s20 = sshll.u32 %s881_s9, 4  ;;  %s449_s20 = int_to_ptr.hbm [resolvable:$true] %s448_s20 }
  0x17   :  { %179 = vmatpush.bf16.msra.mxu0 %v595_v0  ;;  %v603_v2 = vld [vmem:[#allocation7 + $0x38] sm:$0xff]  ;;  %v593_v3 = vld [vmem:[#allocation5 + $0x28] sm:$0xff]  ;;  %v602_v4 = vld [vmem:[#allocation7 + $0x30] sm:$0xff]  ;;  %s446_s17 = sshll.u32 %s791_s16, 4  ;;  %s447_s17 = int_to_ptr.vmem [resolvable:$true] %s446_s17 }
  0x18   :  { %261 = vmatpush.bf16.msra.mxu1 %v603_v2  ;;  %v601_v5 = vld [vmem:[#allocation7 + $0x28] sm:$0xff]  ;;  %v592_v6 = vld [vmem:[#allocation5 + $0x20] sm:$0xff]  ;;  %v591_v8 = vld [vmem:[#allocation5 + $0x18] sm:$0xff] }
  0x19   :  { %v600_v7 = vld [vmem:[#allocation7 + $0x20] sm:$0xff]  ;;  %v599_v9 = vld [vmem:[#allocation7 + $0x18] sm:$0xff]  ;;  %v590_v10 = vld [vmem:[#allocation5 + $0x10] sm:$0xff] }
  0x1a   :  { %v598_v11 = vld [vmem:[#allocation7 + $0x10] sm:$0xff]  ;;  %v589_v12 = vld [vmem:[#allocation5 + $0x8] sm:$0xff]  ;;  %v588_v14 = vld [vmem:[#allocation5] sm:$0xff] }
  0x1b   :  { %180 = vmatpush.bf16.msra.mxu0 %v594_v1  ;;  %v597_v13 = vld [vmem:[#allocation7 + $0x8] sm:$0xff]  ;;  %v109_v15 = vld [vmem:[#allocation2] sm:$0xff]  ;;  %v596_v17 = vld [vmem:[#allocation7] sm:$0xff] }
  0x1c   :  { %262 = vmatpush.bf16.msra.mxu1 %v602_v4  ;;  %v127_v16 = vpack.c.bf16 %v109_v15, %v109_v15  ;;  %v611_v18 = vld [vmem:[#allocation8 + $0x38] sm:$0xff]  ;;  %v610_v19 = vld [vmem:[#allocation8 + $0x30] sm:$0xff]  ;;  %v609_v20 = vld [vmem:[#allocation8 + $0x28] sm:$0xff] }
  0x1d   :  { %344 = vmatpush.bf16.msra.mxu2 %v611_v18  ;;  %v608_v21 = vld [vmem:[#allocation8 + $0x20] sm:$0xff]  ;;  %v607_v22 = vld [vmem:[#allocation8 + $0x18] sm:$0xff]  ;;  %v606_v23 = vld [vmem:[#allocation8 + $0x10] sm:$0xff] }
  0x1e   :  { %v628_v24 = vld [vmem:[%s874_s2] ss:$0 sm:$0xff]  ;;  %v605_v29 = vld [vmem:[#allocation8 + $0x8] sm:$0xff]  ;;  %v604_v30 = vld [vmem:[#allocation8] sm:$0xff] }
  0x1f   :  { %181 = vmatpush.bf16.msra.mxu0 %v593_v3  ;;  %v619_v31 = vld [vmem:[#allocation10 + $0x38] sm:$0xff]  ;;  %v618_v32 = vld [vmem:[#allocation10 + $0x30] sm:$0xff]  ;;  %v617_v33 = vld [vmem:[#allocation10 + $0x28] sm:$0xff] }
  0x20   :  { %263 = vmatpush.bf16.msra.mxu1 %v601_v5  ;;  %427 = vmatpush.bf16.msra.mxu3 %v619_v31  ;;  %v616_v34 = vld [vmem:[#allocation10 + $0x20] sm:$0xff]  ;;  %v615_v35 = vld [vmem:[#allocation10 + $0x18] sm:$0xff]  ;;  %v614_v36 = vld [vmem:[#allocation10 + $0x10] sm:$0xff] }
  0x21   :  { %345 = vmatpush.bf16.msra.mxu2 %v610_v19  ;;  %v629_v37 = vld [vmem:[%s876_s4] ss:$0 sm:$0xff]  ;;  %v613_v43 = vld [vmem:[#allocation10 + $0x8] sm:$0xff]  ;;  %v612_v44 = vld [vmem:[#allocation10] sm:$0xff] }
  0x22   :  { %v630_v45 = vld [vmem:[%s878_s6] ss:$0 sm:$0xff] }
  0x23   :  { %182 = vmatpush.bf16.msra.mxu0 %v592_v6  ;;  %v631_v51 = vld [vmem:[%s880_s8] ss:$0 sm:$0xff] }
  0x24   :  { %264 = vmatpush.bf16.msra.mxu1 %v600_v7  ;;  %428 = vmatpush.bf16.msra.mxu3 %v618_v32 }
  0x25   :  { %346 = vmatpush.bf16.msra.mxu2 %v609_v20 }
  0x27   :  { %183 = vmatpush.bf16.msra.mxu0 %v591_v8 }
  0x28   :  { %265 = vmatpush.bf16.msra.mxu1 %v599_v9  ;;  %429 = vmatpush.bf16.msra.mxu3 %v617_v33 }
  0x29   :  { %347 = vmatpush.bf16.msra.mxu2 %v608_v21 }
  0x2b   :  { %184 = vmatpush.bf16.msra.mxu0 %v590_v10 }
  0x2c   :  { %266 = vmatpush.bf16.msra.mxu1 %v598_v11  ;;  %430 = vmatpush.bf16.msra.mxu3 %v616_v34 }
  0x2d   :  { %348 = vmatpush.bf16.msra.mxu2 %v607_v22 }
  0x2f   :  { %185 = vmatpush.bf16.msra.mxu0 %v589_v12 }
  0x30   :  { %267 = vmatpush.bf16.msra.mxu1 %v597_v13  ;;  %431 = vmatpush.bf16.msra.mxu3 %v615_v35 }
  0x31   :  { %349 = vmatpush.bf16.msra.mxu2 %v606_v23 }
  0x33   :  { %186 = vmatpush.bf16.msra.mxu0 %v588_v14 }
  0x34   :  { %268 = vmatpush.bf16.msra.mxu1 %v596_v17  ;;  %432 = vmatpush.bf16.msra.mxu3 %v614_v36 }
  0x35   :  { %350 = vmatpush.bf16.msra.mxu2 %v605_v29 }
  0x36   :  { %187 = vmatmul.bf16.vlgmr.msra.gmra.mxu0 %v127_v16 }
  0x38   :  { %433 = vmatpush.bf16.msra.mxu3 %v613_v43 }
  0x39   :  { %351 = vmatpush.bf16.msra.mxu2 %v604_v30 }
  0x3c   :  { %434 = vmatpush.bf16.msra.mxu3 %v612_v44 }
  0xb3   :  { %v188_v25 = vpop.f32.mrf.mxu0 }
  0xb4   :  { %v189_v26 = vadd.f32 %v628_v24, %v188_v25 }
  0xb6   :  { %v209_v27 = vpack.c.bf16 %v189_v26, %v189_v26 }
  0xb8   :  { %269 = vmatmul.bf16.vlgmr.msra.gmra.mxu1 %v209_v27 }
  0xbb   :  { %v190_v28 = vpop.f32.mrf.mxu0 }
 0x135   :  { %v270_v38 = vpop.f32.mrf.mxu1 }
 0x136   :  { %v271_v39 = vadd.f32 %v629_v37, %v270_v38 }
 0x138   :  { %v274_v40 = vmax.f32 %v271_v39, 0.0 }
 0x13a   :  { %v292_v41 = vpack.c.bf16 %v274_v40, %v274_v40 }
 0x13c   :  { %352 = vmatmul.bf16.vlgmr.msra.gmra.mxu2 %v292_v41 }
 0x13d   :  { %v272_v42 = vpop.f32.mrf.mxu1 }
 0x1bf   :  { %v353_v46 = vpop.f32.mrf.mxu2 }
 0x1c0   :  { %v354_v47 = vadd.f32 %v630_v45, %v353_v46 }
 0x1c2   :  { %v357_v48 = vmax.f32 %v354_v47, 0.0 }
 0x1c4   :  { %v375_v49 = vpack.c.bf16 %v357_v48, %v357_v48 }
 0x1c6   :  { %435 = vmatmul.bf16.vlgmr.msra.gmra.mxu3 %v375_v49 }
 0x1c7   :  { %v355_v50 = vpop.f32.mrf.mxu2 }
 0x249   :  { %v436_v52 = vpop.f32.mrf.mxu3 }
 0x24a   :  { %v437_v53 = vadd.f32 %v631_v51, %v436_v52 }
 0x24c   :  { %440 = vst [vmem:[#allocation11] sm:$0xff] %v437_v53 }
 0x24d   :  { %451 = dma.vmem_to_hbm [thread:$0]  %s447_s17, 128, %s449_s20, [#allocation4]  }
 0x251   :  { %v438_v54 = vpop.f32.mrf.mxu3 }
 0x252   :  { %782 = dma.done.wait [#allocation4], 128  }
 0x253   :  { %783 = vsyncadd [#allocation4], 4294967168 }
 0x254   :  { %456 = vsyncpa [#allocation3], 1 }
 0x255   :  { %457 = vsyncpa [#allocation6], 1 }
 0x256   :  { %458 = vsyncpa [#allocation9], 1 }
 0x257   :  { %459 = vsyncpa [#allocation4], 1 }

</bundles_post_ra>
